<compile_context>
chip_gen: v6e
topology: v6e:2x2x1
jax: 0.10.0
libtpu: 0.0.40
codegen_flags: <defaults>
</compile_context>

<pallas_src>
import functools

import jax
import jax.numpy as jnp
from jax.experimental import pallas as pl
from jax.experimental.pallas import tpu as pltpu


def _round_up(x, m):
    return ((x + m - 1) // m) * m


# ----------------------------- Pallas kernel ------------------------------ #
def _fused_rgcn_kernel(a_ref, x_ref, w_ref, o_ref, acc_ref):
    """Grid = (R, dst_tiles, src_tiles).

    For each (relation r, dst tile i):
        acc  = sum_k  A[r, i, k] @ X_aug[r, k]     (bf16 MXU, f32 accumulate)
        out  = acc @ W_aug[r]                      (f32 epilogue, once at k==last)
    """
    k = pl.program_id(2)

    @pl.when(k == 0)
    def _init():
        acc_ref[...] = jnp.zeros_like(acc_ref)

    # Dominant matmul: (tile_dst, tile_src) @ (tile_src, in_pad), bf16 inputs.
    acc_ref[...] += jnp.dot(a_ref[0], x_ref[0],
                            preferred_element_type=jnp.float32)

    @pl.when(k == pl.num_programs(2) - 1)
    def _finalize():
        # The ones-column of X_aug times the bias row of W_aug contributes
        # rowsum(A_norm) * b, i.e. bias only for dst nodes that have edges —
        # identical to A @ (X W^T + b).
        o_ref[0] = jnp.dot(acc_ref[...], w_ref[0],
                           preferred_element_type=jnp.float32).astype(o_ref.dtype)


@functools.partial(jax.jit, static_argnums=(3, 4))
def _fused_rgcn_call(a_stack, x_stack, w_stack, tile_dst, tile_src):
    """a_stack (R, Ndp, Nsp) bf16, x_stack (R, Nsp, in_pad) bf16,
    w_stack (R, in_pad, out_pad) f32  ->  (R, Ndp, out_pad) f32."""
    r_dim, n_dst_pad, n_src_pad = a_stack.shape
    in_pad = x_stack.shape[-1]
    out_pad = w_stack.shape[-1]
    grid = (r_dim, n_dst_pad // tile_dst, n_src_pad // tile_src)

    # VMEM budget: double-buffered streamed blocks + f32 accumulator + headroom.
    blk_bytes = (tile_dst * tile_src * 2      # A tile (bf16)
                 + tile_src * in_pad * 2      # X tile (bf16)
                 + in_pad * out_pad * 4       # W_aug (f32)
                 + tile_dst * out_pad * 4)    # output tile (f32)
    acc_bytes = tile_dst * in_pad * 4
    vmem_limit = int(min(max(4 * blk_bytes + acc_bytes, 16 * 1024 * 1024),
                         48 * 1024 * 1024))

    return pl.pallas_call(
        _fused_rgcn_kernel,
        out_shape=jax.ShapeDtypeStruct((r_dim, n_dst_pad, out_pad), jnp.float32),
        grid_spec=pltpu.PrefetchScalarGridSpec(
            num_scalar_prefetch=0,
            grid=grid,
            in_specs=[
                pl.BlockSpec((1, tile_dst, tile_src), lambda r, i, k: (r, i, k)),
                pl.BlockSpec((1, tile_src, in_pad), lambda r, i, k: (r, k, 0)),
                pl.BlockSpec((1, in_pad, out_pad), lambda r, i, k: (r, 0, 0)),
            ],
            out_specs=pl.BlockSpec((1, tile_dst, out_pad),
                                   lambda r, i, k: (r, i, 0)),
            scratch_shapes=[pltpu.VMEM((tile_dst, in_pad), jnp.float32)],
        ),
        compiler_params=pltpu.CompilerParams(
            dimension_semantics=("parallel", "parallel", "arbitrary"),
            vmem_limit_bytes=vmem_limit,
        ),
    )(a_stack, x_stack, w_stack)


# ------------------------------ Module glue ------------------------------- #
class HeteroRGCNLayerPallas:
    """JAX/Pallas equivalent of the PyTorch HeteroRGCNLayer."""

    # 128-aligned tile caps — sized so double-buffered blocks stay far below
    # the default scoped-VMEM limits of v5e (16 MiB) / v6e / v7x (32 MiB).
    MAX_TILE_DST = 256
    MAX_TILE_SRC = 512

    def __init__(self, in_size, out_size, etypes, agg="stack", key=None):
        self.in_size = in_size
        self.out_size = out_size
        self.agg = agg
        # Lane-dense padded sizes; the extra +1 input column carries the bias.
        self.in_pad = _round_up(in_size + 1, 128)
        self.out_pad = _round_up(out_size, 128)

        self.weights = {}   # (out, in)  -- kept for the pure-JAX reference
        self.biases = {}    # (out,)
        self.w_aug = {}     # (in_pad, out_pad) f32 = [W^T ; b ; 0], built once

        key = jax.random.PRNGKey(0) if key is None else key
        bound = 1.0 / (in_size ** 0.5)  # mimic nn.Linear default init range
        for name in etypes:
            key, kw, kb = jax.random.split(key, 3)
            w = jax.random.uniform(kw, (out_size, in_size), jnp.float32,
                                   -bound, bound)
            b = jax.random.uniform(kb, (out_size,), jnp.float32, -bound, bound)
            self.weights[name] = w
            self.biases[name] = b
            w_aug = jnp.zeros((self.in_pad, self.out_pad), jnp.float32)
            w_aug = w_aug.at[:in_size, :out_size].set(w.T)
            w_aug = w_aug.at[in_size, :out_size].set(b)
            self.w_aug[name] = w_aug

    def __call__(self, canonical_etypes, adj_norm_dict, feat_dict, ntypes):
        # TODO(synk): for large sparse graphs, replace the dense padded adjacency
        # with a scalar-prefetch gather kernel over per-dst neighbour lists
        # (O(nnz) HBM traffic instead of O(N_dst*N_src)).
        n_dst_max = max(adj_norm_dict[ce].shape[0] for ce in canonical_etypes)
        n_src_max = max(adj_norm_dict[ce].shape[1] for ce in canonical_etypes)
        tile_dst = min(self.MAX_TILE_DST, _round_up(n_dst_max, 128))
        tile_src = min(self.MAX_TILE_SRC, _round_up(n_src_max, 128))
        n_dst_pad = _round_up(n_dst_max, tile_dst)
        n_src_pad = _round_up(n_src_max, tile_src)

        a_blocks, x_blocks, w_blocks = [], [], []
        for (srctype, etype, dsttype) in canonical_etypes:
            a = adj_norm_dict[(srctype, etype, dsttype)]
            x = feat_dict[srctype]
            nd, ns = a.shape
            a_p = jnp.zeros((n_dst_pad, n_src_pad), jnp.bfloat16)
            a_p = a_p.at[:nd, :ns].set(a.astype(jnp.bfloat16))
            x_p = jnp.zeros((n_src_pad, self.in_pad), jnp.bfloat16)
            x_p = x_p.at[:ns, :self.in_size].set(x.astype(jnp.bfloat16))
            x_p = x_p.at[:ns, self.in_size].set(1.0)  # ones column -> rowsum(A)*b
            a_blocks.append(a_p)
            x_blocks.append(x_p)
            w_blocks.append(self.w_aug[etype])

        stacked = _fused_rgcn_call(jnp.stack(a_blocks), jnp.stack(x_blocks),
                                   jnp.stack(w_blocks), tile_dst, tile_src)

        per_dst = {nt: [] for nt in ntypes}
        for r, (srctype, etype, dsttype) in enumerate(canonical_etypes):
            nd = adj_norm_dict[(srctype, etype, dsttype)].shape[0]
            per_dst[dsttype].append(stacked[r, :nd, :self.out_size])

        out = {}
        for nt in ntypes:
            if not per_dst[nt]:
                continue  # ntype receives no messages (would KeyError in torch)
            if self.agg == "stack":
                out[nt] = jnp.stack(per_dst[nt], axis=1)      # (N, n_rel, out)
            elif self.agg == "sum":
                out[nt] = functools.reduce(jnp.add, per_dst[nt])
            else:  # 'mean'-style cross reducer
                out[nt] = functools.reduce(jnp.add, per_dst[nt]) / len(per_dst[nt])
        return out


# --------------------------- Pure-JAX reference ---------------------------- #
def _reference(layer, canonical_etypes, adj_norm_dict, feat_dict, ntypes):
    per_dst = {nt: [] for nt in ntypes}
    for (srctype, etype, dsttype) in canonical_etypes:
        wh = feat_dict[srctype] @ layer.weights[etype].T + layer.biases[etype]
        per_dst[dsttype].append(adj_norm_dict[(srctype, etype, dsttype)] @ wh)
    return {nt: jnp.stack(v, axis=1) for nt, v in per_dst.items() if v}


# --------------------------------- main ------------------------------------ #
if __name__ == "__main__":
    key = jax.random.PRNGKey(0)

    # Small heterogeneous graph: 'user' and 'item' node types, 3 relations.
    n_user, n_item = 8, 12
    in_size, out_size = 16, 32
    ntypes = ["user", "item"]
    canonical_etypes = [
        ("user", "follows", "user"),
        ("user", "clicks", "item"),
        ("item", "clicked_by", "user"),
    ]
    etypes = [e for (_, e, _) in canonical_etypes]

    # Dense adjacency per relation, shape (N_dst, N_src), in-degree normalized.
    def make_adj(k, n_dst, n_src):
        a = jax.random.bernoulli(k, 0.4, (n_dst, n_src)).astype(jnp.float32)
        deg = jnp.maximum(a.sum(axis=1, keepdims=True), 1.0)
        return a / deg

    key, k1, k2, k3, kf_u, kf_i, kp = jax.random.split(key, 7)
    adj_norm_dict = {
        ("user", "follows", "user"): make_adj(k1, n_user, n_user),
        ("user", "clicks", "item"): make_adj(k2, n_item, n_user),
        ("item", "clicked_by", "user"): make_adj(k3, n_user, n_item),
    }
    feat_dict = {
        "user": jax.random.normal(kf_u, (n_user, in_size), jnp.float32),
        "item": jax.random.normal(kf_i, (n_item, in_size), jnp.float32),
    }

    layer = HeteroRGCNLayerPallas(in_size, out_size, etypes, agg="stack", key=kp)

    out = layer(canonical_etypes, adj_norm_dict, feat_dict, ntypes)
    out = jax.tree_util.tree_map(jax.block_until_ready, out)

    ref = _reference(layer, canonical_etypes, adj_norm_dict, feat_dict, ntypes)

    assert out["user"].shape == (n_user, 2, out_size)
    assert out["item"].shape == (n_item, 1, out_size)
    # bf16 streaming of A / X (f32 accumulate) -> looser tolerance than f32.
    for nt in out:
        max_err = float(jnp.max(jnp.abs(out[nt] - ref[nt])))
        assert jnp.allclose(out[nt], ref[nt], atol=5e-2, rtol=5e-2), (nt, max_err)

    print("KERNEL_OK")
</pallas_src>

<mosaic_0001>
module attributes {stable_mosaic.version = 11 : i64} {
  func.func @_fused_rgcn_kernel(%arg0: i32, %arg1: i32, %arg2: i32, %arg3: memref<1x128x128xbf16, #tpu.memory_space<vmem>>, %arg4: memref<1x128x128xbf16, #tpu.memory_space<vmem>>, %arg5: memref<1x128x128xf32, #tpu.memory_space<vmem>>, %arg6: memref<1x128x128xf32, #tpu.memory_space<vmem>>, %arg7: memref<128x128xf32, #tpu.memory_space<vmem>>) attributes {dimension_semantics = [#tpu.dimension_semantics<parallel>, #tpu.dimension_semantics<parallel>, #tpu.dimension_semantics<arbitrary>], iteration_bounds = array<i64: 3, 1, 1>, scalar_prefetch = 0 : i64, scratch_operands = 1 : i64, tpu.core_type = #tpu.core_type<tc>, window_params = [{transform_indices = @transform_0, window_bounds = array<i64: 1, 128, 128>}, {transform_indices = @transform_1, window_bounds = array<i64: 1, 128, 128>}, {transform_indices = @transform_2, window_bounds = array<i64: 1, 128, 128>}, {transform_indices = @transform_3, window_bounds = array<i64: 1, 128, 128>}]} {
    %c0_i32 = arith.constant 0 : i32
    %0 = arith.cmpi eq, %arg2, %c0_i32 : i32
    %1 = arith.extui %0 : i1 to i32
    %c0_i32_0 = arith.constant 0 : i32
    %2 = arith.cmpi ne, %1, %c0_i32_0 : i32
    scf.if %2 {
      %cst_12 = arith.constant 0.000000e+00 : f32
      %14 = vector.broadcast %cst_12 : f32 to vector<128x128xf32>
      %c0_13 = arith.constant 0 : index
      %c0_14 = arith.constant 0 : index
      %15 = vector.load %arg7[%c0_13, %c0_14] : memref<128x128xf32, #tpu.memory_space<vmem>>, vector<128x128xf32>
      tpu.vector_store %arg7[%c0_13, %c0_14], %14 {strides = array<i32>} : memref<128x128xf32, #tpu.memory_space<vmem>>, vector<128x128xf32>,
    } else {
    }
    %c0 = arith.constant 0 : index
    %c0_1 = arith.constant 0 : index
    %3 = vector.load %arg7[%c0, %c0_1] : memref<128x128xf32, #tpu.memory_space<vmem>>, vector<128x128xf32>
    %c0_2 = arith.constant 0 : index
    %c0_3 = arith.constant 0 : index
    %c0_4 = arith.constant 0 : index
    %4 = vector.load %arg3[%c0_2, %c0_3, %c0_4] : memref<1x128x128xbf16, #tpu.memory_space<vmem>>, vector<1x128x128xbf16>
    %5 = vector.shape_cast %4 : vector<1x128x128xbf16> to vector<128x128xbf16>
    %c0_5 = arith.constant 0 : index
    %c0_6 = arith.constant 0 : index
    %c0_7 = arith.constant 0 : index
    %6 = vector.load %arg4[%c0_5, %c0_6, %c0_7] : memref<1x128x128xbf16, #tpu.memory_space<vmem>>, vector<1x128x128xbf16>
    %7 = vector.shape_cast %6 : vector<1x128x128xbf16> to vector<128x128xbf16>
    %cst = arith.constant dense<0.000000e+00> : vector<128x128xf32>
    %8 = tpu.matmul %5, %7, %cst {dimension_numbers = #tpu.dot_dimension_numbers<[1], [0], [0], [1], [0, 0, 1, 1], [], []>} : vector<128x128xbf16>, vector<128x128xbf16>, vector<128x128xf32> -> vector<128x128xf32>
    %9 = arith.addf %3, %8 : vector<128x128xf32>
    %c0_8 = arith.constant 0 : index
    %c0_9 = arith.constant 0 : index
    %10 = vector.load %arg7[%c0_8, %c0_9] : memref<128x128xf32, #tpu.memory_space<vmem>>, vector<128x128xf32>
    tpu.vector_store %arg7[%c0_8, %c0_9], %9 {strides = array<i32>} : memref<128x128xf32, #tpu.memory_space<vmem>>, vector<128x128xf32>,
    %c0_i32_10 = arith.constant 0 : i32
    %11 = arith.cmpi eq, %arg2, %c0_i32_10 : i32
    %12 = arith.extui %11 : i1 to i32
    %c0_i32_11 = arith.constant 0 : i32
    %13 = arith.cmpi ne, %12, %c0_i32_11 : i32
    scf.if %13 {
      %c0_12 = arith.constant 0 : index
      %c0_13 = arith.constant 0 : index
      %14 = vector.load %arg7[%c0_12, %c0_13] : memref<128x128xf32, #tpu.memory_space<vmem>>, vector<128x128xf32>
      %c0_14 = arith.constant 0 : index
      %c0_15 = arith.constant 0 : index
      %c0_16 = arith.constant 0 : index
      %15 = vector.load %arg5[%c0_14, %c0_15, %c0_16] : memref<1x128x128xf32, #tpu.memory_space<vmem>>, vector<1x128x128xf32>
      %16 = vector.shape_cast %15 : vector<1x128x128xf32> to vector<128x128xf32>
      %cst_17 = arith.constant dense<0.000000e+00> : vector<128x128xf32>
      %17 = tpu.matmul %14, %16, %cst_17 {dimension_numbers = #tpu.dot_dimension_numbers<[1], [0], [0], [1], [0, 0, 1, 1], [], []>} : vector<128x128xf32>, vector<128x128xf32>, vector<128x128xf32> -> vector<128x128xf32>
      %c0_18 = arith.constant 0 : index
      %c0_19 = arith.constant 0 : index
      %c0_20 = arith.constant 0 : index
      %18 = vector.load %arg6[%c0_18, %c0_19, %c0_20] : memref<1x128x128xf32, #tpu.memory_space<vmem>>, vector<1x128x128xf32>
      %19 = vector.shape_cast %18 : vector<1x128x128xf32> to vector<128x128xf32>
      %20 = vector.shape_cast %17 : vector<128x128xf32> to vector<1x128x128xf32>
      tpu.vector_store %arg6[%c0_18, %c0_19, %c0_20], %20 {strides = array<i32>} : memref<1x128x128xf32, #tpu.memory_space<vmem>>, vector<1x128x128xf32>,
    } else {
    }
    return
  }
  func.func @transform_0(%arg0: i32, %arg1: i32, %arg2: i32) -> (i32, i32, i32) {
    %c0_i32 = arith.constant 0 : i32
    return %arg0, %arg1, %arg2 : i32, i32, i32
  }
  func.func @transform_1(%arg0: i32, %arg1: i32, %arg2: i32) -> (i32, i32, i32) {
    %c0_i32 = arith.constant 0 : i32
    %c0_i32_0 = arith.constant 0 : i32
    return %arg0, %arg2, %c0_i32 : i32, i32, i32
  }
  func.func @transform_2(%arg0: i32, %arg1: i32, %arg2: i32) -> (i32, i32, i32) {
    %c0_i32 = arith.constant 0 : i32
    %c0_i32_0 = arith.constant 0 : i32
    %c0_i32_1 = arith.constant 0 : i32
    return %arg0, %c0_i32, %c0_i32_0 : i32, i32, i32
  }
  func.func @transform_3(%arg0: i32, %arg1: i32, %arg2: i32) -> (i32, i32, i32) {
    %c0_i32 = arith.constant 0 : i32
    %c0_i32_0 = arith.constant 0 : i32
    return %arg0, %arg1, %c0_i32 : i32, i32, i32
  }
}

</mosaic_0001>

<bundles_post_ra>
// kernel: _fused_rgcn_call.1
= control target key start
LH: loop header
LB: loop body
LE: loop exit
PB: predicated region body
PF: predicated region fallthrough
CT: control target
= control target key end

     0   :  { %s1678_s0 = inlined_call_operand.hbm [shape: bf16[3,128,128], index: 0, kind: input, shape index: {}]   ;;  %s1679_s1 = inlined_call_operand.hbm [shape: bf16[3,128,128], index: 1, kind: input, shape index: {}]   ;;  %s1680_s2 = inlined_call_operand.hbm [shape: f32[3,128,128], index: 2, kind: input, shape index: {}]   ;;  %s1681_s3 = inlined_call_operand.hbm [shape: f32[3,128,128], index: 3, kind: output, shape index: {}]  }
   0x1   :  { %1684 = sst [smem:[#allocation16_spill]] %s1679_s1 }
   0x2   :  { %8 = vsyncpa [#allocation4], 0 }
   0x3   :  { %10 = vsyncpa [#allocation4 + $0x1], 0 }
   0x4   :  { %11 = vsyncpa [#allocation7], 0 }
   0x5   :  { %13 = vsyncpa [#allocation7 + $0x1], 0 }
   0x6   :  { %14 = vsyncpa [#allocation5], 0 }
   0x7   :  { %16 = vsyncpa [#allocation5 + $0x1], 0  ;;  %s1417_s12 = smov 0   ;;  %s1419_s13 = smov 0  }
   0x8   :  { %s1421_s14 = smov 0   ;;  %s1423_s15 = smov 0  }
   0x9   :  { %s1425_s16 = smov 0   ;;  %s1427_s17 = smov 0  }
   0xa LB: > { %1685 = sst [smem:[#allocation13_spill]] %s1373_s14  ;;  %s1448_s18 = sadd.s32 4294967295, %s1385_s17   ;;  %s1385_s17 = sphi %s1427_s17, %s22_s17   ;;  %s1381_s16 = sphi %s1425_s16, %s1701_s16   ;;  %s1377_s15 = sphi %s1423_s15, %s1700_s15   ;;  %s1373_s14 = sphi %s1421_s14, %s1696_s14   ;;  %s1369_s13 = sphi %s1419_s13, %s1699_s13   ;;  %s1365_s12 = sphi %s1417_s12, %s1698_s12  }
   0xb   : > { %s945_s19 = sadd.s32 4294967294, %s1385_s17   ;;  %s41_s20 = sadd.s32 1, %s1381_s16 }
   0xc   : > { %s52_s21 = sadd.s32 1, %s1373_s14  ;;  %p43_p0 = scmp.ge.s32.totalorder %s41_s20, 3 }
   0xd   : > { %p59_p1 = scmp.ne.s32.totalorder %s1373_s14, %s1369_s13  ;;  %p60_p2 = scmp.eq.s32.totalorder %s1385_s17, 0 }
   0xe   : > { %p65_p3 = scmp.ne.s32.totalorder %s1369_s13, %s1365_s12  ;;  %s1703_s20 = smov (%p43_p0, %s41_s20), 0 }
   0xf   : > { %1686 = sst [smem:[#allocation14_spill]] %s1703_s20  ;;  %p1460_p4 = por %p60_p2, %p59_p1 }
  0x10   : > { %p66_p5 = scmp.eq.s32.totalorder %s1448_s18, 0  ;;  %s45_s23 = ssub.s32 %s1381_s16, %s1703_s20 }
  0x11   : > { %p145_p6 = scmp.eq.s32.totalorder %s1448_s18, 2  ;;  %p50_p7 = scmp.eq.s32.totalorder %s45_s23, 0 }
  0x12   : > { %p1468_p8 = por %p66_p5, %p65_p3  ;;  %p151_p10 = scmp.eq.s32.totalorder %s945_s19, 2 }
  0x13   : > { %p1472_p9 = por %p145_p6, %p59_p1  ;;  %p1145_p12 = scmp.lt.s32.totalorder %s1385_s17, 3 }
  0x14   : > { %s1477_s26 = scalar_select %p50_p7, %s1373_s14, %s52_s21  }
  0x15   : > { %p1479_p11 = por %p151_p10, %p65_p3  ;;  %s1485_s28 = sand.u32 1, %s1373_s14  }
  0x16   : > { %1690 = sst [smem:[#allocation15_spill]] %s1477_s26  ;;  %s948_s29 = sshll.u32 %s1485_s28, 6 }
  0x17   : > { %s983_s30 = sshll.u32 %s1381_s16, 10  ;;  %p1491_p13 = pnand %p1145_p12, %p1460_p4 }
  0x18   : > { %s195_s5 = sand.u32 1, %s1385_s17   ;;  %s1693_s1 = sld [smem:[#allocation16_spill]] }
  0x19   : > { %s199_s9 = scalar_lea.vmem [#allocation6], %s948_s29  ;;  %p957_p0 = scmp.ge.s32.totalorder %s1385_s17, 1 }
  0x1a   : > { %s208_s10 = sshll.u32 %s199_s9, 4  ;;  %p237_p1 = scmp.lt.s32.totalorder %s1385_s17, 4  ;;  %s209_s10 = int_to_ptr.vmem [resolvable:$true] %s208_s10 }
  0x1b   : > { %s1505_s11 = scalar_lea.sflag [#allocation7], %s195_s5  ;;  %p1219_p2 = pneg %p1491_p13 }
  0x1c   : > { %s1230_s19 = scalar_lea.vmem %s209_s10, 1024  ;;  %s1387_s21 = smov [#allocation6]  }
  0x1d   : > { %p1231_p3 = scmp.ne.s32.totalorder %s209_s10, %s1230_s19  ;;  %s1235_s22 = sshll.u32 %s1387_s21, 4  ;;  %s1236_s22 = int_to_ptr.vmem [resolvable:$false] %s1235_s22 }
  0x1e   : > { %s207_s8 = scalar_lea.hbm %s1693_s1, %s983_s30  ;;  %s1237_s23 = scalar_lea.vmem %s1236_s22, 2048 }
  0x1f   : > { %p1233_p4 = pnand %p1231_p3, %p1219_p2  ;;  %p1238_p6 = scmp.lt.s32.totalorder %s209_s10, %s1236_s22 }
  0x20   : > { %p1239_p7 = scmp.lt.s32.totalorder %s1237_s23, %s1230_s19 }
  0x21   : > { %p1234_p5 = pneg %p1233_p4 }
  0x22   : > { %p1240_p10 = por %p1239_p7, %p1238_p6 }
  0x24   : > { %p1241_p12 = pnand %p1240_p10, %p1234_p5 }
  0x26   : > { %1244 = shalt.err (!%p1241_p12)
}
  0x27   : > { %s1388_s6 = smov 64   ;;  %s1389_s5 = smov 4  }
  0x28   : > { %1137 = dma.hbm_to_vmem [thread:$0]  (!%p1491_p13), %s207_s8, 1024, %s209_s10, %s1505_s11, %s1388_s6, %s1388_s6, %s1389_s5  }
  0x29   : > { %p1519_p3 = pnand %p957_p0, %p237_p1  ;;  %s184_s21 = scalar_lea.hbm %s1678_s0, %s983_s30 }
  0x2a   : > { %s175_s22 = scalar_lea.vmem [#allocation3], %s948_s29  ;;  %s954_s1 = sshll.u32 %s1485_s28, 7 }
  0x2b   : > { %s185_s23 = sshll.u32 %s175_s22, 4  ;;  %s172_s20 = scalar_lea.sflag [#allocation4], %s1485_s28  ;;  %s186_s23 = int_to_ptr.vmem [resolvable:$true] %s185_s23 }
  0x2c   : > { %s1258_s26 = scalar_lea.vmem %s186_s23, 1024  ;;  %s1390_s8 = smov [#allocation3]  }
  0x2d   : > { %p1259_p4 = scmp.ne.s32.totalorder %s186_s23, %s1258_s26  ;;  %s1263_s10 = sshll.u32 %s1390_s8, 4  ;;  %s1264_s10 = int_to_ptr.vmem [resolvable:$false] %s1263_s10 }
  0x2e   : > { %s1265_s14 = scalar_lea.vmem %s1264_s10, 2048  ;;  %p1266_p1 = scmp.lt.s32.totalorder %s186_s23, %s1264_s10 }
  0x2f   : > { %p1261_p5 = pnand %p1259_p4, %p1219_p2  ;;  %p1267_p6 = scmp.lt.s32.totalorder %s1265_s14, %s1258_s26 }
  0x31   : > { %p1262_p0 = pneg %p1261_p5  ;;  %p1268_p7 = por %p1267_p6, %p1266_p1 }
  0x33   : > { %p1269_p10 = pnand %p1268_p7, %p1262_p0 }
  0x35   : > { %1272 = shalt.err (!%p1269_p10)
}
  0x36   : > { %1134 = dma.hbm_to_vmem [thread:$0]  (!%p1491_p13), %s184_s21, 1024, %s186_s23, %s172_s20, %s1388_s6, %s1388_s6, %s1389_s5  }
  0x37   : > { %s985_s28 = sshll.u32 %s1381_s16, 11  ;;  %s222_s29 = scalar_lea.vmem [#allocation8], %s954_s1 }
  0x38   : > { %s229_s30 = sshll.u32 %s222_s29, 4  ;;  %s228_s22 = scalar_lea.hbm %s1680_s2, %s985_s28  ;;  %s230_s30 = int_to_ptr.vmem [resolvable:$true] %s229_s30 }
  0x39   : > { %s1286_s8 = scalar_lea.vmem %s230_s30, 2048  ;;  %s1391_s14 = smov [#allocation8]  }
  0x3a   : > { %p1287_p12 = scmp.ne.s32.totalorder %s230_s30, %s1286_s8  ;;  %s1291_s26 = sshll.u32 %s1391_s14, 4  ;;  %s1292_s26 = int_to_ptr.vmem [resolvable:$false] %s1291_s26 }
  0x3b   : > { %s1293_s10 = scalar_lea.vmem %s1292_s26, 4096  ;;  %p1294_p0 = scmp.lt.s32.totalorder %s230_s30, %s1292_s26 }
  0x3c   : > { %p1289_p4 = pnand %p1287_p12, %p1219_p2  ;;  %p1295_p1 = scmp.lt.s32.totalorder %s1293_s10, %s1286_s8 }
  0x3e   : > { %p1290_p5 = pneg %p1289_p4  ;;  %p1296_p6 = por %p1295_p1, %p1294_p0 }
  0x40   : > { %p1297_p7 = pnand %p1296_p6, %p1290_p5 }
  0x42   : > { %1300 = shalt.err (!%p1297_p7)
}
  0x43   : > { %s1392_s1 = smov 128   ;;  %s1393_s20 = smov 8  }
  0x44   : > { %1140 = dma.hbm_to_vmem [thread:$0]  (!%p1491_p13), %s228_s22, 2048, %s230_s30, %s1505_s11, %s1392_s1, %s1392_s1, %s1393_s20  }
  0x45   : > { %241 = sbr.rel (%p1519_p3) target bundleno = 547 (0x223), region = 32  ;;  %s1550_s6 = sand.u32 (!%p1519_p3), 1, %s1369_s13  }
  0x46   : > { %s958_s5 = sshll.u32 (!%p1519_p3), %s1550_s6, 6  ;;  %s244_s21 = scalar_lea.sflag (!%p1519_p3), [#allocation4], %s1550_s6 }
  0x47   : > { %s1554_s23 = scalar_lea.vmem (!%p1519_p3), [#allocation3], %s958_s5 }
  0x4a   : > { %1352 = dma.done.wait (%p1468_p8), %s244_s21, 1024  }
  0x4b   : > { %1354 = vsyncadd (%p1468_p8), %s244_s21, 4294966272  ;;  %s252_s4 = sand.u32 1, %s1448_s18   ;;  %s1561_s7 = scalar_lea.vmem [#allocation6], %s958_s5 }
  0x4c   : > { %s253_s11 = scalar_lea.sflag [#allocation7], %s252_s4 }
  0x4d   : > { %1356 = dma.done.wait (%p1468_p8), %s253_s11, 3072  }
  0x4e   : > { %1358 = vsyncadd (%p1468_p8), %s253_s11, 4294964224  ;;  %v1201_v0 = vld [vmem:[%s1561_s7 + $0x38] sm:$0xff]   ;;  %v1202_v1 = vld [vmem:[%s1561_s7 + $0x30] sm:$0xff]   ;;  %s960_s18 = sshll.u32 %s1550_s6, 7  ;;  %s986_s29 = sshll.u32 %s1377_s15, 11 }
  0x4f   : > { %1035 = vmatprep.subr.bf16.mxu0 %v1201_v0  ;;  %v1203_v2 = vld [vmem:[%s1561_s7 + $0x28] sm:$0xff]   ;;  %v1204_v3 = vld [vmem:[%s1561_s7 + $0x20] sm:$0xff]   ;;  %v1205_v5 = vld [vmem:[%s1561_s7 + $0x18] sm:$0xff]   ;;  %s1577_s24 = scalar_lea.vmem [#allocation8], %s960_s18  ;;  %s1606_s28 = scalar_lea.vmem [#allocation9], %s960_s18 }
  0x50   : > { %1036 = vmatpush3.bf16.msra.mxu0 %v1201_v0  ;;  %v1209_v4 = vld [vmem:[%s1554_s23] sm:$0xff]   ;;  %v1206_v6 = vld [vmem:[%s1561_s7 + $0x10] sm:$0xff]   ;;  %v629_v7 = vld [vmem:[%s1577_s24 + $0x78] sm:$0xff]  ;;  %s807_s30 = sshll.u32 %s1606_s28, 4  ;;  %s1627_s22 = scalar_lea.hbm %s1681_s3, %s986_s29  ;;  %s1629_s30 = int_to_ptr.vmem [resolvable:$true] %s807_s30 }
  0x51   : > { %1037 = vmatprep.subr.bf16.mxu0 %v1202_v1  ;;  %1051 = vmatprep.mubr.bf16.mxu0 %v1209_v4  ;;  %v628_v8 = vld [vmem:[%s1577_s24 + $0x70] sm:$0xff]  ;;  %v627_v9 = vld [vmem:[%s1577_s24 + $0x68] sm:$0xff]  ;;  %v626_v11 = vld [vmem:[%s1577_s24 + $0x60] sm:$0xff]  ;;  %s792_s8 = scalar_lea.sflag [#allocation5], %s1550_s6  ;;  %s1301_s14 = scalar_lea.vmem %s1629_s30, 2048 }
  0x52   : > { %1067 = vmatprep.subr.mxu1 %v629_v7  ;;  %v1207_v10 = vld [vmem:[%s1561_s7 + $0x8] sm:$0xff]   ;;  %v625_v12 = vld [vmem:[%s1577_s24 + $0x58] sm:$0xff]  ;;  %v1208_v13 = vld [vmem:[%s1561_s7] sm:$0xff]   ;;  %p1302_p8 = scmp.ne.s32.totalorder %s1629_s30, %s1301_s14  ;;  %s1394_s15 = smov [#allocation9]  }
  0x53   : > { %1068 = vmatpush3.msra.mxu1 %v629_v7  ;;  %v624_v14 = vld [vmem:[%s1577_s24 + $0x50] sm:$0xff]  ;;  %v623_v15 = vld [vmem:[%s1577_s24 + $0x48] sm:$0xff]  ;;  %v622_v16 = vld [vmem:[%s1577_s24 + $0x40] sm:$0xff]  ;;  %s1305_s26 = sshll.u32 %s1394_s15, 4  ;;  %s1306_s26 = int_to_ptr.vmem [resolvable:$false] %s1305_s26 }
  0x54   : > { %1038 = vmatpush3.bf16.msra.mxu0 %v1202_v1  ;;  %1069 = vmatprep.subr.mxu1 %v628_v8  ;;  %v1210_v17 = vld [vmem:[%s1554_s23 + $0x8] sm:$0xff]   ;;  %v621_v18 = vld [vmem:[%s1577_s24 + $0x38] sm:$0xff]  ;;  %v1211_v19 = vld [vmem:[%s1554_s23 + $0x10] sm:$0xff]   ;;  %p1303_p13 = pnand %p1302_p8, %p1472_p9  ;;  %s1307_s10 = scalar_lea.vmem %s1306_s26, 4096 }
  0x55   : > { %1039 = vmatprep.subr.bf16.mxu0 %v1203_v2  ;;  %1070 = vmatpush3.msra.mxu1 %v628_v8  ;;  %v620_v20 = vld [vmem:[%s1577_s24 + $0x30] sm:$0xff]  ;;  %v619_v21 = vld [vmem:[%s1577_s24 + $0x28] sm:$0xff]  ;;  %v618_v22 = vld [vmem:[%s1577_s24 + $0x20] sm:$0xff]  ;;  %p1308_p3 = scmp.lt.s32.totalorder %s1629_s30, %s1306_s26  ;;  %p1309_p10 = scmp.lt.s32.totalorder %s1307_s10, %s1301_s14 }
  0x56   : > { %1071 = vmatprep.subr.mxu1 %v627_v9  ;;  %v1212_v23 = vld [vmem:[%s1554_s23 + $0x18] sm:$0xff]   ;;  %v1213_v25 = vld [vmem:[%s1554_s23 + $0x20] sm:$0xff]   ;;  %v1214_v26 = vld [vmem:[%s1554_s23 + $0x28] sm:$0xff]   ;;  %p1304_p2 = pneg %p1303_p13 }
  0x57   : > { %1072 = vmatpush3.msra.mxu1 %v627_v9  ;;  %v617_v24 = vld [vmem:[%s1577_s24 + $0x18] sm:$0xff]  ;;  %v1215_v27 = vld [vmem:[%s1554_s23 + $0x30] sm:$0xff]   ;;  %v615_v30 = vld [vmem:[%s1577_s24 + $0x8] sm:$0xff]  ;;  %p1310_p12 = por %p1309_p10, %p1308_p3 }
  0x58   : > { %1040 = vmatpush3.bf16.msra.mxu0 %v1203_v2  ;;  %1073 = vmatprep.subr.mxu1 %v626_v11  ;;  %v1216_v28 = vld [vmem:[%s1554_s23 + $0x38] sm:$0xff]   ;;  %v616_v29 = vld [vmem:[%s1577_s24 + $0x10] sm:$0xff]  ;;  %v614_v31 = vld [vmem:[%s1577_s24] sm:$0xff] }
  0x59   : > { %1041 = vmatprep.subr.bf16.mxu0 %v1204_v3  ;;  %1074 = vmatpush3.msra.mxu1 %v626_v11  ;;  %p1311_p4 = pnand %p1310_p12, %p1304_p2 }
  0x5a   : > { %1075 = vmatprep.subr.mxu1 %v625_v12 }
  0x5b   : > { %1076 = vmatpush3.msra.mxu1 %v625_v12 }
  0x5c   : > { %1042 = vmatpush3.bf16.msra.mxu0 %v1204_v3  ;;  %1077 = vmatprep.subr.mxu1 %v624_v14 }
  0x5d   : > { %1043 = vmatprep.subr.bf16.mxu0 %v1205_v5  ;;  %1078 = vmatpush3.msra.mxu1 %v624_v14 }
  0x5e   : > { %1079 = vmatprep.subr.mxu1 %v623_v15 }
  0x5f   : > { %1080 = vmatpush3.msra.mxu1 %v623_v15 }
  0x60   : > { %1044 = vmatpush3.bf16.msra.mxu0 %v1205_v5  ;;  %1081 = vmatprep.subr.mxu1 %v622_v16 }
  0x61   : > { %1045 = vmatprep.subr.bf16.mxu0 %v1206_v6  ;;  %1082 = vmatpush3.msra.mxu1 %v622_v16 }
  0x62   : > { %1083 = vmatprep.subr.mxu1 %v621_v18 }
  0x63   : > { %1084 = vmatpush3.msra.mxu1 %v621_v18 }
  0x64   : > { %1046 = vmatpush3.bf16.msra.mxu0 %v1206_v6  ;;  %1085 = vmatprep.subr.mxu1 %v620_v20 }
  0x65   : > { %1047 = vmatprep.subr.bf16.mxu0 %v1207_v10  ;;  %1086 = vmatpush3.msra.mxu1 %v620_v20 }
  0x66   : > { %1087 = vmatprep.subr.mxu1 %v619_v21 }
  0x67   : > { %1088 = vmatpush3.msra.mxu1 %v619_v21 }
  0x68   : > { %1048 = vmatpush3.bf16.msra.mxu0 %v1207_v10  ;;  %1089 = vmatprep.subr.mxu1 %v618_v22 }
  0x69   : > { %1049 = vmatprep.subr.bf16.mxu0 %v1208_v13  ;;  %1090 = vmatpush3.msra.mxu1 %v618_v22 }
  0x6a   : > { %1091 = vmatprep.subr.mxu1 %v617_v24 }
  0x6b   : > { %1092 = vmatpush3.msra.mxu1 %v617_v24 }
  0x6c   : > { %1050 = vmatpush3.bf16.msra.mxu0 %v1208_v13  ;;  %1093 = vmatprep.subr.mxu1 %v616_v29 }
  0x6d   : > { %1094 = vmatpush3.msra.mxu1 %v616_v29 }
  0x6e   : > { %1095 = vmatprep.subr.mxu1 %v615_v30 }
  0x6f   : > { %1052 = vmatmul.mubr.bf16.vlgmr.msra.gmra.mxu0 %v1210_v17  ;;  %1096 = vmatpush3.msra.mxu1 %v615_v30 }
  0x70   : > { %1055 = vmatprep.mubr.bf16.mxu0 %v1211_v19  ;;  %1097 = vmatprep.subr.mxu1 %v614_v31 }
  0x71   : > { %1098 = vmatpush3.msra.mxu1 %v614_v31 }
  0x77   : > { %1056 = vmatmul.mubr.bf16.gmra.mxu0 %v1212_v23 }
  0x78   : > { %1059 = vmatprep.mubr.bf16.mxu0 %v1213_v25 }
  0x7f   : > { %1060 = vmatmul.mubr.bf16.gmra.mxu0 %v1214_v26 }
  0x80   : > { %1063 = vmatprep.mubr.bf16.mxu0 %v1215_v27 }
  0x87   : > { %1064 = vmatmul.mubr.bf16.gmra.mxu0 %v1216_v28 }
 0x12f   : > { %v1053_v32 = vpop.f32.mrf.mxu0 }
 0x131   : > { %v500_v33 = vpop.f32.mrf.mxu0 }
 0x132   : > { %1099 = vmatprep.mubr.f32.mxu1 %v500_v33 }
 0x133   : > { %v1054_v34 = vpop.f32.mrf.mxu0 }
 0x135   : > { %v503_v35 = vpop.f32.mrf.mxu0 }
 0x136   : > { %1100 = vmatmul.mubr.f32.vlgmr.msra.gmra.mxu1 %v503_v35 }
 0x137   : > { %v1057_v36 = vpop.f32.mrf.mxu0  ;;  %1102 = vmatprep.mubr.f32.mxu1 %v1053_v32 }
 0x139   : > { %v516_v37 = vpop.f32.mrf.mxu0 }
 0x13a   : > { %1103 = vmatmul.mubr.f32.gmra.mxu1 %v1054_v34 }
 0x13b   : > { %v1058_v38 = vpop.f32.mrf.mxu0  ;;  %1105 = vmatprep.mubr.f32.mxu1 %v516_v37 }
 0x13d   : > { %v519_v39 = vpop.f32.mrf.mxu0 }
 0x13e   : > { %1106 = vmatmul.mubr.f32.gmra.mxu1 %v519_v39 }
 0x13f   : > { %v1061_v40 = vpop.f32.mrf.mxu0  ;;  %1108 = vmatprep.mubr.f32.mxu1 %v1057_v36 }
 0x141   : > { %v532_v41 = vpop.f32.mrf.mxu0 }
 0x142   : > { %1109 = vmatmul.mubr.f32.gmra.mxu1 %v1058_v38 }
 0x143   : > { %v1062_v42 = vpop.f32.mrf.mxu0  ;;  %1111 = vmatprep.mubr.f32.mxu1 %v532_v41 }
 0x145   : > { %v535_v43 = vpop.f32.mrf.mxu0 }
 0x146   : > { %1112 = vmatmul.mubr.f32.gmra.mxu1 %v535_v43 }
 0x147   : > { %v1065_v44 = vpop.f32.mrf.mxu0  ;;  %1114 = vmatprep.mubr.f32.mxu1 %v1061_v40 }
 0x149   : > { %v548_v45 = vpop.f32.mrf.mxu0 }
 0x14a   : > { %1115 = vmatmul.mubr.f32.gmra.mxu1 %v1062_v42 }
 0x14b   : > { %v1066_v46 = vpop.f32.mrf.mxu0  ;;  %1117 = vmatprep.mubr.f32.mxu1 %v548_v45 }
 0x14d   : > { %v551_v47 = vpop.f32.mrf.mxu0 }
 0x14e   : > { %1118 = vmatmul.mubr.f32.gmra.mxu1 %v551_v47 }
 0x14f   : > { %1120 = vmatprep.mubr.f32.mxu1 %v1065_v44 }
 0x152   : > { %1121 = vmatmul.mubr.f32.gmra.mxu1 %v1066_v46 }
 0x1f6   : > { %v1101_v48 = vpop.f32.mrf.mxu1 }
 0x1f7   : > { %776 = vst [vmem:[%s1606_s28 + $0x8] sm:$0xff] %v1101_v48 }
 0x1f8   : > { %v696_v49 = vpop.f32.mrf.mxu1 }
 0x1f9   : > { %775 = vst [vmem:[%s1606_s28] sm:$0xff] %v696_v49 }
 0x1fa   : > { %v1104_v50 = vpop.f32.mrf.mxu1 }
 0x1fb   : > { %778 = vst [vmem:[%s1606_s28 + $0x18] sm:$0xff] %v1104_v50 }
 0x1fc   : > { %v706_v51 = vpop.f32.mrf.mxu1 }
 0x1fd   : > { %777 = vst [vmem:[%s1606_s28 + $0x10] sm:$0xff] %v706_v51 }
 0x1fe   : > { %v1107_v52 = vpop.f32.mrf.mxu1 }
 0x1ff   : > { %780 = vst [vmem:[%s1606_s28 + $0x28] sm:$0xff] %v1107_v52 }
 0x200   : > { %v716_v53 = vpop.f32.mrf.mxu1 }
 0x201   : > { %779 = vst [vmem:[%s1606_s28 + $0x20] sm:$0xff] %v716_v53 }
 0x202   : > { %v1110_v54 = vpop.f32.mrf.mxu1 }
 0x203   : > { %782 = vst [vmem:[%s1606_s28 + $0x38] sm:$0xff] %v1110_v54 }
 0x204   : > { %v726_v55 = vpop.f32.mrf.mxu1 }
 0x205   : > { %781 = vst [vmem:[%s1606_s28 + $0x30] sm:$0xff] %v726_v55 }
 0x206   : > { %v1113_v56 = vpop.f32.mrf.mxu1 }
 0x207   : > { %784 = vst [vmem:[%s1606_s28 + $0x48] sm:$0xff] %v1113_v56 }
 0x208   : > { %v736_v57 = vpop.f32.mrf.mxu1 }
 0x209   : > { %783 = vst [vmem:[%s1606_s28 + $0x40] sm:$0xff] %v736_v57 }
 0x20a   : > { %v1116_v58 = vpop.f32.mrf.mxu1 }
 0x20b   : > { %786 = vst [vmem:[%s1606_s28 + $0x58] sm:$0xff] %v1116_v58 }
 0x20c   : > { %v746_v59 = vpop.f32.mrf.mxu1 }
 0x20d   : > { %785 = vst [vmem:[%s1606_s28 + $0x50] sm:$0xff] %v746_v59 }
 0x20e   : > { %v1119_v60 = vpop.f32.mrf.mxu1 }
 0x20f   : > { %788 = vst [vmem:[%s1606_s28 + $0x68] sm:$0xff] %v1119_v60 }
 0x210   : > { %v756_v61 = vpop.f32.mrf.mxu1 }
 0x211   : > { %787 = vst [vmem:[%s1606_s28 + $0x60] sm:$0xff] %v756_v61 }
 0x212   : > { %v1122_v62 = vpop.f32.mrf.mxu1 }
 0x213   : > { %790 = vst [vmem:[%s1606_s28 + $0x78] sm:$0xff] %v1122_v62 }
 0x214   : > { %v766_v63 = vpop.f32.mrf.mxu1 }
 0x215   : > { %789 = vst [vmem:[%s1606_s28 + $0x70] sm:$0xff] %v766_v63 }
 0x216   : > { %1314 = shalt.err (!%p1311_p4)
}
 0x217   : > { %s1315_s1 = scalar_lea.hbm %s1627_s22, 2048  ;;  %s1319_s21 = scalar_lea.hbm %s1681_s3, 6144 }
 0x218   : > { %p1316_p5 = scmp.ne.s32.totalorder %s1627_s22, %s1315_s1  ;;  %p1320_p6 = scmp.lt.s32.totalorder %s1627_s22, %s1681_s3 }
 0x219   : > { %p1321_p7 = scmp.lt.s32.totalorder %s1319_s21, %s1315_s1 }
 0x21a   : > { %p1317_p0 = pnand %p1316_p5, %p1472_p9 }
 0x21b   : > { %p1322_p8 = por %p1321_p7, %p1320_p6 }
 0x21c   : > { %p1318_p1 = pneg %p1317_p0 }
 0x21e   : > { %p1323_p13 = pnand %p1322_p8, %p1318_p1 }
 0x220   : > { %1326 = shalt.err (!%p1323_p13)
}
 0x221   : > { %s1395_s11 = smov 128   ;;  %s1396_s7 = smov 8  }
 0x222   : > { %1129 = dma.vmem_to_hbm [thread:$0]  (%p1472_p9), %s1629_s30, 2048, %s1627_s22, %s792_s8, %s1395_s11, %s1395_s11, %s1396_s7  }
 0x223 PF: > { %p1146_p2 = scmp.ge.s32.totalorder %s1385_s17, 2  ;;  %s822_s18 = sand.u32 1, %s1365_s12  }
 0x224   : > { %s823_s24 = scalar_lea.sflag [#allocation5], %s822_s18 }
 0x225   : > { %p1142_p3 = pnand %p1146_p2, %p1479_p11 }
 0x227   : > { %p1143_p10 = pneg %p1142_p3 }
 0x229   : > { %1360 = dma.done.wait (%p1143_p10), %s823_s24, 2048  }
 0x22a   : > { %1362 = vsyncadd (%p1143_p10), %s823_s24, 4294965248  ;;  %s22_s17 = sadd.s32 1, %s1385_s17   ;;  %s1695_s28 = sld [smem:[#allocation13_spill]] }
 0x22b   : > { %p19_p12 = scmp.ge.s32.totalorder %s22_s17, 5   ;;  %s1696_s14 = sld [smem:[#allocation15_spill]] }
 0x22c   : > { %s1697_s25 = sld [smem:[#allocation14_spill]]  ;;  %s1698_s12 = smov %s1369_s13 }
 0x22d   : > { %s1700_s15 = smov %s1381_s16 }
 0x22e   :  { %21 = sbr.rel (!%p19_p12) target bundleno = 10 (0xa), region = 109 }
 0x230   : > { %s1699_s13 = smov %s1695_s28 }
 0x232   : > { %s1701_s16 = smov %s1697_s25 }
 0x233   :  { %828 = vsyncpa [#allocation4], 1 }
 0x234   :  { %830 = vsyncpa [#allocation4 + $0x1], 1 }
 0x235   :  { %831 = vsyncpa [#allocation7], 1 }
 0x236   :  { %833 = vsyncpa [#allocation7 + $0x1], 1 }
 0x237   :  { %834 = vsyncpa [#allocation5], 1 }
 0x238   :  { %836 = vsyncpa [#allocation5 + $0x1], 1 }

</bundles_post_ra>
